<compile_context>
chip_gen: v5e
topology: v5e:2x2
jax: 0.10.0
libtpu: 0.0.40
codegen_flags: <defaults>
</compile_context>

<pallas_src>
import functools

import jax
import jax.numpy as jnp
from jax.experimental import pallas as pl
from jax.experimental.pallas import tpu as pltpu


_MIN_BLOCK_BYTES = 1 << 20   # never shrink a block below ~1 MiB just for step count


def _swish_kernel(x_ref, o_ref):
    # Compute in f32 so bf16/f16 inputs keep full sigmoid accuracy.
    x = x_ref[...].astype(jnp.float32)
    o_ref[...] = (x * jax.nn.sigmoid(x)).astype(o_ref.dtype)


def _round_up(n: int, m: int) -> int:
    return ((n + m - 1) // m) * m


@functools.lru_cache(maxsize=None)
def _chip_params():
    """Return (physical VMEM bytes, TensorCores sharing the grid)."""
    vmem_phys = 64 << 20          # conservative default (v7x-sized)
    num_tc = 1
    try:
        vmem_phys = int(pltpu.get_tpu_info().vmem_capacity_bytes)
    except Exception:
        pass
    try:
        kind = jax.devices()[0].device_kind.lower()
        if any(t in kind for t in ("v4", "v5p", "v7")):
            num_tc = 2            # megacore / dual-TensorCore chips
    except Exception:
        pass
    return vmem_phys, num_tc


def _pick_tile(count, bytes_per_unit, pack, min_steps, target_bytes):
    """Tile size along one axis: ~target_bytes per block, >= min_steps grid
    steps when possible, never below ~_MIN_BLOCK_BYTES per block, always a
    multiple of `pack` (or the full extent)."""
    if count <= pack:
        return count
    target = max(pack, (target_bytes // bytes_per_unit) // pack * pack)
    floor = max(pack, (_MIN_BLOCK_BYTES // bytes_per_unit) // pack * pack)
    by_steps = _round_up(pl.cdiv(count, min_steps), pack)
    tile = min(target, max(by_steps, floor))
    return count if tile >= count else tile


def _swish_impl(x: jax.Array) -> jax.Array:
    orig_shape = x.shape
    dtype = x.dtype
    if not jnp.issubdtype(dtype, jnp.floating):
        raise TypeError(f"swish requires a floating dtype, got {dtype}")
    n = x.size
    if n == 0:
        return x

    itemsize = jnp.dtype(dtype).itemsize
    sub_pack = 8 * max(1, 4 // itemsize)     # sublane packing: f32->8, bf16->16, i8->32

    vmem_phys, num_tc = _chip_params()
    if vmem_phys >= (100 << 20):             # v5e / v6e class: 128 MiB VMEM
        target_block_bytes = 16 << 20
    else:                                    # v7x class: 64 MiB VMEM
        target_block_bytes = min(8 << 20, vmem_phys // 8)
    min_steps = 2 * num_tc if num_tc > 1 else 3

    flat = x.reshape(-1)                     # metadata-only for contiguous inputs

    # Fast path: flattened size is a multiple of 128 -> lane-dense 2-D slab,
    # no pad, no slice, fully unmasked vector stores.
    width = next((w for w in (2048, 1024, 512, 256, 128) if n % w == 0), None)

    if width is not None:
        rows = n // width
        x2 = flat.reshape(rows, width)
        tr = _pick_tile(rows, width * itemsize, sub_pack, min_steps, target_block_bytes)
        grid = (pl.cdiv(rows, tr),)
        block_bytes = tr * width * itemsize
        in_spec = pl.BlockSpec((tr, width), lambda i: (i, 0))
        out_spec = pl.BlockSpec((tr, width), lambda i: (i, 0))
        out_shape = jax.ShapeDtypeStruct((rows, width), dtype)
        arg = x2
    else:
        # Misaligned total size: tile the flat 1-D array directly. Block length
        # is a multiple of 128; the pl.cdiv grid lets Pallas mask the partial
        # last block. No pad / slice passes outside the kernel.
        lane_pack = 128 * sub_pack           # 1024 (f32) / 2048 (bf16) / ...
        blk = _pick_tile(n, itemsize, lane_pack, min_steps, target_block_bytes)
        grid = (pl.cdiv(n, blk),)
        block_bytes = blk * itemsize
        in_spec = pl.BlockSpec((blk,), lambda i: (i,))
        out_spec = pl.BlockSpec((blk,), lambda i: (i,))
        out_shape = jax.ShapeDtypeStruct((n,), dtype)
        arg = flat

    # VMEM limit from the actual double-buffered footprint (in + out), with
    # margin, capped well inside the chip's physical VMEM.
    vmem_limit = int(min(vmem_phys * 3 // 4,
                         max(32 << 20, 4 * block_bytes + (16 << 20))))

    out = pl.pallas_call(
        _swish_kernel,
        out_shape=out_shape,
        grid_spec=pltpu.PrefetchScalarGridSpec(
            num_scalar_prefetch=0,
            grid=grid,
            in_specs=[in_spec],
            out_specs=out_spec,
        ),
        compiler_params=pltpu.CompilerParams(
            dimension_semantics=("parallel",),
            vmem_limit_bytes=vmem_limit,
        ),
    )(arg)

    return out.reshape(orig_shape)


swish = jax.jit(_swish_impl)


if __name__ == "__main__":
    key = jax.random.PRNGKey(0)
    cases = [
        ((2, 4, 16, 16), jnp.float32),   # aligned 4-D (n = 2048, single block)
        ((8, 256), jnp.float32),         # aligned 2-D (n = 2048)
        ((16, 128), jnp.bfloat16),       # aligned bf16
        ((3, 7, 5), jnp.float32),        # misaligned tiny -> full-extent 1-D block
        ((5, 333), jnp.bfloat16),        # misaligned bf16 -> full-extent 1-D block
        ((300, 1024), jnp.float32),      # aligned, multi-step grid + partial last row block
        ((3, 100017), jnp.float32),      # misaligned, tiled 1-D with masked partial last block
    ]
    for shape, dtype in cases:
        key, sub = jax.random.split(key)
        x = jax.random.normal(sub, shape, dtype=jnp.float32).astype(dtype)
        y = jax.block_until_ready(swish(x))

        xf = x.astype(jnp.float32)
        y_ref = (xf * jax.nn.sigmoid(xf)).astype(dtype)

        assert y.shape == x.shape and y.dtype == x.dtype, (shape, dtype)
        tol = 1e-6 if dtype == jnp.float32 else 2e-2
        assert jnp.allclose(y.astype(jnp.float32), y_ref.astype(jnp.float32),
                            atol=tol, rtol=tol), (shape, dtype)

    print("KERNEL_OK")
</pallas_src>

<mosaic_0001>
module attributes {stable_mosaic.version = 11 : i64} {
  func.func @_swish_kernel(%arg0: i32, %arg1: memref<1x2048xf32, #tpu.memory_space<vmem>>, %arg2: memref<1x2048xf32, #tpu.memory_space<vmem>>) attributes {dimension_semantics = [#tpu.dimension_semantics<parallel>], iteration_bounds = array<i64: 1>, scalar_prefetch = 0 : i64, scratch_operands = 0 : i64, tpu.core_type = #tpu.core_type<tc>, window_params = [{transform_indices = @transform_0, window_bounds = array<i64: 1, 2048>}, {transform_indices = @transform_1, window_bounds = array<i64: 1, 2048>}]} {
    %c0 = arith.constant 0 : index
    %c0_0 = arith.constant 0 : index
    %0 = vector.load %arg1[%c0, %c0_0] : memref<1x2048xf32, #tpu.memory_space<vmem>>, vector<1x2048xf32>
    %1 = arith.negf %0 : vector<1x2048xf32>
    %2 = math.exp %1 : vector<1x2048xf32>
    %cst = arith.constant 1.000000e+00 : f32
    %3 = vector.broadcast %cst : f32 to vector<1x2048xf32>
    %4 = arith.addf %3, %2 : vector<1x2048xf32>
    %5 = arith.divf %3, %4 : vector<1x2048xf32>
    %6 = arith.mulf %0, %5 : vector<1x2048xf32>
    %c0_1 = arith.constant 0 : index
    %c0_2 = arith.constant 0 : index
    %7 = vector.load %arg2[%c0_1, %c0_2] : memref<1x2048xf32, #tpu.memory_space<vmem>>, vector<1x2048xf32>
    tpu.vector_store %arg2[%c0_1, %c0_2], %6 {strides = array<i32>} : memref<1x2048xf32, #tpu.memory_space<vmem>>, vector<1x2048xf32>,
    return
  }
  func.func @transform_0(%arg0: i32) -> (i32, i32) {
    %c0_i32 = arith.constant 0 : i32
    %c0_i32_0 = arith.constant 0 : i32
    return %arg0, %c0_i32 : i32, i32
  }
  func.func @transform_1(%arg0: i32) -> (i32, i32) {
    %c0_i32 = arith.constant 0 : i32
    %c0_i32_0 = arith.constant 0 : i32
    return %arg0, %c0_i32 : i32, i32
  }
}

</mosaic_0001>

<bundles_post_ra>
// kernel: _swish_impl.1
= control target key start
LH: loop header
LB: loop body
LE: loop exit
PB: predicated region body
PF: predicated region fallthrough
CT: control target
= control target key end

     0   :  { %s88_s0 = inlined_call_operand.vmem [shape: f32[1,2048], index: 0, kind: input, shape index: {}]   ;;  %s89_s1 = inlined_call_operand.vmem [shape: f32[1,2048], index: 1, kind: output, shape index: {}]  }
   0x1   :  { %v8_v0 = vld [vmem:[%s88_s0] sm:$0xff]  ;;  %v9_v1 = vld [vmem:[%s88_s0 + $0x8] sm:$0xff] }
   0x2   :  { %v56_v2 = vmul.f32 -1.442695, %v8_v0  ;;  %v57_v3 = vmul.f32 -1.442695, %v9_v1 }
   0x4   :  { %58 = vpow2.f32 %v56_v2 }
   0x5   :  { %60 = vpow2.f32 %v57_v3 }
   0xa   :  { %v59_v4 = vpop.eup %58 }
   0xb   :  { %v61_v5 = vpop.eup %60  ;;  %v16_v6 = vadd.f32 1.0, %v59_v4 }
   0xc   :  { %v17_v7 = vadd.f32 1.0, %v61_v5 }
   0xd   :  { %62 = vrcp.f32 %v16_v6  ;;  %vm23_vm0 = vweird.f32 %v16_v6  ;;  %v29_v11 = vand.u32 2147483648, %v16_v6  ;;  %v27_v14 = vand.u32 2147483647, %v16_v6 }
   0xe   :  { %64 = vrcp.f32 %v17_v7  ;;  %v44_v15 = vand.u32 2147483648, %v17_v7  ;;  %vm38_vm2 = vweird.f32 %v17_v7  ;;  %v42_v17 = vand.u32 2147483647, %v17_v7 }
   0xf   :  { %v30_v19 = vor.u32 1.1754944e-38, %v29_v11  ;;  %vm28_vm5 = vcmp.eq.f32.partialorder %v27_v14, 8.507059e+37 }
  0x10   :  { %v45_v22 = vor.u32 1.1754944e-38, %v44_v15  ;;  %vm43_vm7 = vcmp.eq.f32.partialorder %v42_v17, 8.507059e+37 }
  0x13   :  { %v63_v8 = vpop.eup %62 }
  0x14   :  { %v65_v9 = vpop.eup %64  ;;  %v19_v10 = vmul.f32 %v63_v8, %v16_v6  ;;  %vm24_vm1 = vweird.f32 %v63_v8 }
  0x15   :  { %v34_v12 = vmul.f32 %v65_v9, %v17_v7  ;;  %vm39_vm3 = vweird.f32 %v65_v9  ;;  %vm25_vm4 = vmor %vm23_vm0, %vm24_vm1 }
  0x16   :  { %v20_v13 = vsub.f32 1.0, %v19_v10  ;;  %vm40_vm6 = vmor %vm38_vm2, %vm39_vm3 }
  0x17   :  { %v35_v16 = vsub.f32 1.0, %v34_v12 }
  0x18   :  { %v21_v18 = vmul.f32 %v63_v8, %v20_v13 }
  0x19   :  { %v36_v20 = vmul.f32 %v65_v9, %v35_v16 }
  0x1a   :  { %v22_v21 = vadd.f32 %v63_v8, %v21_v18 }
  0x1b   :  { %v37_v23 = vadd.f32 %v65_v9, %v36_v20 }
  0x1c   :  { %v26_v24 = vsel %vm25_vm4, %v63_v8, %v22_v21 }
  0x1d   :  { %v31_v25 = vsel %vm28_vm5, %v30_v19, %v26_v24  ;;  %v41_v26 = vsel %vm40_vm6, %v65_v9, %v37_v23 }
  0x1e   :  { %v48_v27 = vmul.f32 %v31_v25, %v8_v0  ;;  %v46_v28 = vsel %vm43_vm7, %v45_v22, %v41_v26 }
  0x1f   :  { %v49_v29 = vmul.f32 %v46_v28, %v9_v1 }
  0x20   :  { %50 = vst [vmem:[%s89_s1] sm:$0xff] %v48_v27 }
  0x21   :  { %51 = vst [vmem:[%s89_s1 + $0x8] sm:$0xff] %v49_v29 }

</bundles_post_ra>
